<compile_context>
chip_gen: v7x
topology: tpu7x:2x2x1
jax: 0.10.0
libtpu: 0.0.40
codegen_flags: <defaults>
</compile_context>

<pallas_src>
import functools
import math

import jax
import jax.numpy as jnp
from jax.experimental import pallas as pl
from jax.experimental.pallas import tpu as pltpu


OBS_SHAPES = ((8,), (8,), (16,))   # flat observation components (obs_dim = 32)
ACT_DIM = 3
HIDDEN_SIZES = (256, 256)


def _epilogue_dtype():
    """bf16 epilogue on v6e/v7x (bf16 VALUs); f32 on v5e and older (no bf16 VPU)."""
    try:
        kind = jax.devices()[0].device_kind.lower()
    except Exception:
        kind = ""
    if any(tag in kind for tag in ("v2", "v3", "v4", "v5")):
        return jnp.float32
    return jnp.bfloat16


# ----------------------------------------------------------------------------
# Fused Q-MLP kernel:  relu(x@W1+b1) -> relu(h1@W2+b2) -> <h2, w3_row> + b3
# All weights + one M-tile of activations stay in VMEM; hidden activations
# never touch HBM.
# ----------------------------------------------------------------------------
def _q_mlp_kernel(x_ref, w1_ref, b1_ref, w2_ref, b2_ref, w3_ref, b3_ref, o_ref,
                  *, epi_dtype):
    # ---- layer 1: [tm, 35] @ [35, 256] on the MXU (bf16 operands, f32 acc) ----
    h1 = jnp.dot(x_ref[...], w1_ref[...], preferred_element_type=jnp.float32)
    h1 = jnp.maximum(h1.astype(epi_dtype) + b1_ref[...].astype(epi_dtype), 0.0)
    h1 = h1.astype(jnp.bfloat16)
    # ---- layer 2: [tm, 256] @ [256, 256] on the MXU ----
    h2 = jnp.dot(h1, w2_ref[...], preferred_element_type=jnp.float32)
    h2 = jnp.maximum(h2.astype(epi_dtype) + b2_ref[...].astype(epi_dtype), 0.0)
    # ---- layer 3 (256 -> 1) OFF the MXU: VPU multiply + lane reduction (XLU) ----
    # w3 is a (1, 256) f32 row; reduce in f32 to keep matmul-equivalent accuracy.
    q = jnp.sum(h2.astype(jnp.float32) * w3_ref[...], axis=-1, keepdims=True)
    o_ref[...] = (q + b3_ref[...]).astype(o_ref.dtype)


def _pick_m_tile(B):
    if B <= 128:
        return B                      # one full-M block; small batch is launch-bound
    for tm in (512, 256, 128):        # biggest tile that still gives >= 2 grid steps
        if pl.cdiv(B, tm) >= 2:       # (v7x shards the 'parallel' axis over 2 TCs)
            return tm
    return 128


def fused_q_mlp(x, w1, b1, w2, b2, w3, b3):
    """x: [B, Din] bf16; w1/w2: bf16 [in, out]; w3: f32 (1, H2); b*: f32 (1, out).
    Returns q: [B, 1] f32."""
    B, Din = x.shape
    H1 = w1.shape[1]
    H2 = w2.shape[1]

    tm = _pick_m_tile(B)
    grid = (pl.cdiv(B, tm),)
    rep = lambda i: (0, 0)            # weights / biases: resident, same block every step

    kernel = functools.partial(_q_mlp_kernel, epi_dtype=_epilogue_dtype())
    return pl.pallas_call(
        kernel,
        out_shape=jax.ShapeDtypeStruct((B, 1), jnp.float32),
        grid=grid,
        in_specs=[
            pl.BlockSpec((tm, Din), lambda i: (i, 0)),   # x tile (batch-tiled)
            pl.BlockSpec((Din, H1), rep),                # W1
            pl.BlockSpec((1, H1), rep),                  # b1
            pl.BlockSpec((H1, H2), rep),                 # W2
            pl.BlockSpec((1, H2), rep),                  # b2
            pl.BlockSpec((1, H2), rep),                  # w3 row (f32)
            pl.BlockSpec((1, 1), rep),                   # b3 scalar
        ],
        out_specs=pl.BlockSpec((tm, 1), lambda i: (i, 0)),
        compiler_params=pltpu.CompilerParams(
            dimension_semantics=("parallel",),           # shard batch tiles across TCs (v7x)
        ),
    )(x, w1, b1, w2, b2, w3, b3)


# ----------------------------------------------------------------------------
# Parameter init (PyTorch nn.Linear default-like), pre-layouted for the kernel:
#   hidden W stored [in, out] bf16, biases (1, out) f32, last layer as (1, 256)
#   f32 row + (1, 1) f32 bias.
# ----------------------------------------------------------------------------
def _uniform(key, shape, fan_in):
    bound = 1.0 / jnp.sqrt(jnp.float32(fan_in))
    return jax.random.uniform(key, shape, jnp.float32, -bound, bound)


def init_params(key):
    obs_dim = sum(math.prod(s) for s in OBS_SHAPES)
    sizes = [obs_dim + ACT_DIM] + list(HIDDEN_SIZES) + [1]
    ks = jax.random.split(key, 2 * (len(sizes) - 1))
    p = {}
    for j in range(len(sizes) - 1):
        fin, fout = sizes[j], sizes[j + 1]
        w = _uniform(ks[2 * j], (fin, fout), fin)        # [in, out]
        b = _uniform(ks[2 * j + 1], (1, fout), fin)      # (1, out)
        if j == len(sizes) - 2:                          # last layer: 256 -> 1
            p[f"w{j+1}"] = w.reshape(1, fin)             # (1, 256) f32 row (VPU/XLU path)
            p[f"b{j+1}"] = b                             # (1, 1) f32
        else:
            p[f"w{j+1}"] = w.astype(jnp.bfloat16)        # MXU operand
            p[f"b{j+1}"] = b                             # f32 (cast to epilogue dtype in-kernel)
    return p


def effnet_q_forward(params, obs, act):
    """obs: tuple of [B, d_i] f32 arrays, act: [B, act_dim] f32 -> q: [B] f32."""
    # torch.cat((*obs, act), -1); the bf16 cast fuses into the concat, so the only
    # batch-scaled HBM input to the kernel is half-width.
    x = jnp.concatenate(tuple(obs) + (act,), axis=-1).astype(jnp.bfloat16)
    q = fused_q_mlp(
        x,
        params["w1"], params["b1"],
        params["w2"], params["b2"],
        params["w3"], params["b3"],
    )
    return q[:, 0]   # torch.squeeze(q, -1)


if __name__ == "__main__":
    key = jax.random.PRNGKey(0)
    pkey, ikey = jax.random.split(key)
    params = init_params(pkey)

    B = 2
    ks = jax.random.split(ikey, len(OBS_SHAPES) + 1)
    obs = tuple(
        jax.random.normal(ks[i], (B,) + OBS_SHAPES[i], jnp.float32)
        for i in range(len(OBS_SHAPES))
    )
    act = jax.random.normal(ks[-1], (B, ACT_DIM), jnp.float32)

    fwd = jax.jit(effnet_q_forward)
    q = fwd(params, obs, act)
    jax.block_until_ready(q)
    assert q.shape == (B,), q.shape
    assert bool(jnp.all(jnp.isfinite(q)))

    # Pure-JAX f32 reference (HIGHEST precision) to sanity-check the bf16 kernel.
    def ref(params, obs, act):
        hp = jax.lax.Precision.HIGHEST
        x = jnp.concatenate(tuple(obs) + (act,), axis=-1)
        h = jnp.maximum(jnp.dot(x, params["w1"].astype(jnp.float32), precision=hp)
                        + params["b1"], 0.0)
        h = jnp.maximum(jnp.dot(h, params["w2"].astype(jnp.float32), precision=hp)
                        + params["b2"], 0.0)
        return jnp.dot(h, params["w3"][0], precision=hp) + params["b3"][0, 0]

    q_ref = ref(params, obs, act)
    assert bool(jnp.allclose(q, q_ref, rtol=5e-2, atol=5e-2)), (q, q_ref)
    print("KERNEL_OK")
</pallas_src>

<mosaic_0001>
module attributes {stable_mosaic.version = 11 : i64} {
  func.func @_q_mlp_kernel(%arg0: i32, %arg1: memref<2x35xbf16, #tpu.memory_space<vmem>>, %arg2: memref<35x256xbf16, #tpu.memory_space<vmem>>, %arg3: memref<1x256xf32, #tpu.memory_space<vmem>>, %arg4: memref<256x256xbf16, #tpu.memory_space<vmem>>, %arg5: memref<1x256xf32, #tpu.memory_space<vmem>>, %arg6: memref<1x256xf32, #tpu.memory_space<vmem>>, %arg7: memref<1x1xf32, #tpu.memory_space<vmem>>, %arg8: memref<2x1xf32, #tpu.memory_space<vmem>>) attributes {dimension_semantics = [#tpu.dimension_semantics<parallel>], iteration_bounds = array<i64: 1>, scalar_prefetch = 0 : i64, scratch_operands = 0 : i64, tpu.core_type = #tpu.core_type<tc>, window_params = [{transform_indices = @transform_0, window_bounds = array<i64: 2, 35>}, {pipeline_mode = #tpu.pipeline_mode<synchronous>, transform_indices = @transform_1, window_bounds = array<i64: 35, 256>}, {pipeline_mode = #tpu.pipeline_mode<synchronous>, transform_indices = @transform_2, window_bounds = array<i64: 1, 256>}, {pipeline_mode = #tpu.pipeline_mode<synchronous>, transform_indices = @transform_3, window_bounds = array<i64: 256, 256>}, {pipeline_mode = #tpu.pipeline_mode<synchronous>, transform_indices = @transform_4, window_bounds = array<i64: 1, 256>}, {pipeline_mode = #tpu.pipeline_mode<synchronous>, transform_indices = @transform_5, window_bounds = array<i64: 1, 256>}, {pipeline_mode = #tpu.pipeline_mode<synchronous>, transform_indices = @transform_6, window_bounds = array<i64: 1, 1>}, {transform_indices = @transform_7, window_bounds = array<i64: 2, 1>}]} {
    %c0 = arith.constant 0 : index
    %c0_0 = arith.constant 0 : index
    %0 = vector.load %arg1[%c0, %c0_0] : memref<2x35xbf16, #tpu.memory_space<vmem>>, vector<2x35xbf16>
    %c0_1 = arith.constant 0 : index
    %c0_2 = arith.constant 0 : index
    %1 = vector.load %arg2[%c0_1, %c0_2] : memref<35x256xbf16, #tpu.memory_space<vmem>>, vector<35x256xbf16>
    %cst = arith.constant dense<0.000000e+00> : vector<2x256xf32>
    %2 = tpu.matmul %0, %1, %cst {dimension_numbers = #tpu.dot_dimension_numbers<[1], [0], [0], [1], [0, 0, 1, 1], [], []>} : vector<2x35xbf16>, vector<35x256xbf16>, vector<2x256xf32> -> vector<2x256xf32>
    %3 = arith.truncf %2 : vector<2x256xf32> to vector<2x256xbf16>
    %c0_3 = arith.constant 0 : index
    %c0_4 = arith.constant 0 : index
    %4 = vector.load %arg3[%c0_3, %c0_4] : memref<1x256xf32, #tpu.memory_space<vmem>>, vector<1x256xf32>
    %5 = arith.truncf %4 : vector<1x256xf32> to vector<1x256xbf16>
    %6 = vector.broadcast %5 : vector<1x256xbf16> to vector<2x256xbf16>
    %7 = arith.addf %3, %6 : vector<2x256xbf16>
    %cst_5 = arith.constant 0.000000e+00 : bf16
    %8 = vector.broadcast %cst_5 : bf16 to vector<2x256xbf16>
    %9 = arith.maximumf %7, %8 : vector<2x256xbf16>
    %c0_6 = arith.constant 0 : index
    %c0_7 = arith.constant 0 : index
    %10 = vector.load %arg4[%c0_6, %c0_7] : memref<256x256xbf16, #tpu.memory_space<vmem>>, vector<256x256xbf16>
    %cst_8 = arith.constant dense<0.000000e+00> : vector<2x256xf32>
    %11 = tpu.matmul %9, %10, %cst_8 {dimension_numbers = #tpu.dot_dimension_numbers<[1], [0], [0], [1], [0, 0, 1, 1], [], []>} : vector<2x256xbf16>, vector<256x256xbf16>, vector<2x256xf32> -> vector<2x256xf32>
    %12 = arith.truncf %11 : vector<2x256xf32> to vector<2x256xbf16>
    %c0_9 = arith.constant 0 : index
    %c0_10 = arith.constant 0 : index
    %13 = vector.load %arg5[%c0_9, %c0_10] : memref<1x256xf32, #tpu.memory_space<vmem>>, vector<1x256xf32>
    %14 = arith.truncf %13 : vector<1x256xf32> to vector<1x256xbf16>
    %15 = vector.broadcast %14 : vector<1x256xbf16> to vector<2x256xbf16>
    %16 = arith.addf %12, %15 : vector<2x256xbf16>
    %cst_11 = arith.constant 0.000000e+00 : bf16
    %17 = vector.broadcast %cst_11 : bf16 to vector<2x256xbf16>
    %18 = arith.maximumf %16, %17 : vector<2x256xbf16>
    %19 = arith.extf %18 : vector<2x256xbf16> to vector<2x256xf32>
    %c0_12 = arith.constant 0 : index
    %c0_13 = arith.constant 0 : index
    %20 = vector.load %arg6[%c0_12, %c0_13] : memref<1x256xf32, #tpu.memory_space<vmem>>, vector<1x256xf32>
    %21 = vector.broadcast %20 : vector<1x256xf32> to vector<2x256xf32>
    %22 = arith.mulf %19, %21 : vector<2x256xf32>
    %cst_14 = arith.constant dense<0.000000e+00> : vector<2xf32>
    %23 = vector.multi_reduction <add>, %22, %cst_14 [1] : vector<2x256xf32> to vector<2xf32>
    %24 = vector.shape_cast %23 : vector<2xf32> to vector<2x1xf32>
    %c0_15 = arith.constant 0 : index
    %c0_16 = arith.constant 0 : index
    %25 = vector.load %arg7[%c0_15, %c0_16] : memref<1x1xf32, #tpu.memory_space<vmem>>, vector<1x1xf32>
    %26 = vector.broadcast %25 : vector<1x1xf32> to vector<2x1xf32>
    %27 = arith.addf %24, %26 : vector<2x1xf32>
    %c0_17 = arith.constant 0 : index
    %c0_18 = arith.constant 0 : index
    %28 = vector.load %arg8[%c0_17, %c0_18] : memref<2x1xf32, #tpu.memory_space<vmem>>, vector<2x1xf32>
    tpu.vector_store %arg8[%c0_17, %c0_18], %27 {strides = array<i32>} : memref<2x1xf32, #tpu.memory_space<vmem>>, vector<2x1xf32>,
    return
  }
  func.func @transform_0(%arg0: i32) -> (i32, i32) {
    %c0_i32 = arith.constant 0 : i32
    %c0_i32_0 = arith.constant 0 : i32
    return %arg0, %c0_i32 : i32, i32
  }
  func.func @transform_1(%arg0: i32) -> (i32, i32) {
    %c0_i32 = arith.constant 0 : i32
    %c0_i32_0 = arith.constant 0 : i32
    %c0_i32_1 = arith.constant 0 : i32
    return %c0_i32, %c0_i32_0 : i32, i32
  }
  func.func @transform_2(%arg0: i32) -> (i32, i32) {
    %c0_i32 = arith.constant 0 : i32
    %c0_i32_0 = arith.constant 0 : i32
    %c0_i32_1 = arith.constant 0 : i32
    return %c0_i32, %c0_i32_0 : i32, i32
  }
  func.func @transform_3(%arg0: i32) -> (i32, i32) {
    %c0_i32 = arith.constant 0 : i32
    %c0_i32_0 = arith.constant 0 : i32
    %c0_i32_1 = arith.constant 0 : i32
    return %c0_i32, %c0_i32_0 : i32, i32
  }
  func.func @transform_4(%arg0: i32) -> (i32, i32) {
    %c0_i32 = arith.constant 0 : i32
    %c0_i32_0 = arith.constant 0 : i32
    %c0_i32_1 = arith.constant 0 : i32
    return %c0_i32, %c0_i32_0 : i32, i32
  }
  func.func @transform_5(%arg0: i32) -> (i32, i32) {
    %c0_i32 = arith.constant 0 : i32
    %c0_i32_0 = arith.constant 0 : i32
    %c0_i32_1 = arith.constant 0 : i32
    return %c0_i32, %c0_i32_0 : i32, i32
  }
  func.func @transform_6(%arg0: i32) -> (i32, i32) {
    %c0_i32 = arith.constant 0 : i32
    %c0_i32_0 = arith.constant 0 : i32
    %c0_i32_1 = arith.constant 0 : i32
    return %c0_i32, %c0_i32_0 : i32, i32
  }
  func.func @transform_7(%arg0: i32) -> (i32, i32) {
    %c0_i32 = arith.constant 0 : i32
    %c0_i32_0 = arith.constant 0 : i32
    return %arg0, %c0_i32 : i32, i32
  }
}

</mosaic_0001>

<bundles_post_ra>
// kernel: effnet_q_forward.1
= control target key start
LH: loop header
LB: loop body
LE: loop exit
PB: predicated region body
PF: predicated region fallthrough
CT: control target
= control target key end

     0   :  { %s727_s0 = inlined_call_operand.vmem [shape: bf16[2,35], index: 0, kind: input, shape index: {}]   ;;  %s728_s1 = inlined_call_operand.hbm [shape: bf16[35,256], index: 1, kind: input, shape index: {}]   ;;  %s729_s2 = inlined_call_operand.vmem [shape: f32[1,256], index: 2, kind: input, shape index: {}]   ;;  %s730_s3 = inlined_call_operand.hbm [shape: bf16[256,256], index: 3, kind: input, shape index: {}]   ;;  %s731_s4 = inlined_call_operand.vmem [shape: f32[1,256], index: 4, kind: input, shape index: {}]   ;;  %s732_s5 = inlined_call_operand.vmem [shape: f32[1,256], index: 5, kind: input, shape index: {}]   ;;  %s733_s6 = inlined_call_operand.<no memory space> [shape: f32[1,1], index: 6, kind: input, shape index: {}]   ;;  %s734_s7 = inlined_call_operand.vmem [shape: f32[2,1], index: 7, kind: output, shape index: {}]  }
   0x1   :  { %v12_v0 = vstv %s733_s6 }
   0x2   :  { %13 = vst [vmem:[#allocation2] sm:$0x1] %v12_v0 }
   0x3   :  { %14 = vsyncpa [#allocation4], 0 }
   0x4   :  { %15 = vsyncpa [#allocation6], 0  ;;  %s631_s26 = smov [#allocation3]   ;;  %s583_s30 = scalar_lea.hbm %s728_s1, 640 }
   0x5   :  { %s23_s27 = sshll.u32 %s631_s26, 4  ;;  %p584_p0 = scmp.ne.s32.totalorder %s728_s1, %s583_s30  ;;  %s24_s27 = int_to_ptr.vmem [resolvable:$true] %s23_s27 }
   0x6   :  { %p587_p1 = scmp.lt.u32.totalorder %s583_s30, %s728_s1 }
   0x8   :  { %p589_p2 = pnand %p587_p1, %p584_p0 }
   0xa   :  { %592 = shalt.err (!%p589_p2)
}
   0xb   :  { %s593_s6 = scalar_lea.vmem %s24_s27, 640  ;;  %p598_p4 = scmp.lt.s32.totalorder %s24_s27, %s24_s27 }
   0xc   :  { %p594_p3 = scmp.ne.s32.totalorder %s24_s27, %s593_s6  ;;  %p599_p5 = scmp.lt.s32.totalorder %s593_s6, %s593_s6 }
   0xe   :  { %p600_p6 = por %p599_p5, %p598_p4 }
  0x10   :  { %p601_p7 = pnand %p600_p6, %p594_p3 }
  0x12   :  { %604 = shalt.err (!%p601_p7)
}
  0x13   :  { %s632_s12 = smov 128   ;;  %s633_s13 = smov 8  }
  0x14   :  { %29 = dma.hbm_to_vmem [thread:$0]  %s728_s1, 640, %s24_s27, [#allocation4], %s632_s12, %s632_s12, %s633_s13  }
  0x15   :  { %s634_s16 = smov [#allocation5]   ;;  %s605_s20 = scalar_lea.hbm %s730_s3, 4096 }
  0x16   :  { %s37_s17 = sshll.u32 %s634_s16, 4  ;;  %p606_p8 = scmp.ne.s32.totalorder %s730_s3, %s605_s20  ;;  %s38_s17 = int_to_ptr.vmem [resolvable:$true] %s37_s17 }
  0x17   :  { %p609_p9 = scmp.lt.u32.totalorder %s605_s20, %s730_s3 }
  0x19   :  { %p611_p10 = pnand %p609_p9, %p606_p8 }
  0x1b   :  { %614 = shalt.err (!%p611_p10)
}
  0x1c   :  { %s615_s25 = scalar_lea.vmem %s38_s17, 4096  ;;  %p620_p12 = scmp.lt.s32.totalorder %s38_s17, %s38_s17 }
  0x1d   :  { %p616_p11 = scmp.ne.s32.totalorder %s38_s17, %s615_s25  ;;  %p621_p13 = scmp.lt.s32.totalorder %s615_s25, %s615_s25 }
  0x1f   :  { %p622_p0 = por %p621_p13, %p620_p12 }
  0x21   :  { %p623_p1 = pnand %p622_p0, %p616_p11 }
  0x23   :  { %626 = shalt.err (!%p623_p1)
}
  0x24   :  { %43 = dma.hbm_to_vmem [thread:$0]  %s730_s3, 4096, %s38_s17, [#allocation6], %s632_s12, %s632_s12, %s633_s13  }
  0x25   :  { %627 = dma.done.wait [#allocation4], 640  }
  0x26   :  { %628 = vsyncadd [#allocation4], 4294966656 }
  0x27   :  { %629 = dma.done.wait [#allocation6], 4096  }
  0x28   :  { %630 = vsyncadd [#allocation6], 4294963200  ;;  %v635_v1 = vmov 0   ;;  %vm92_vm0 = vcmask 1040384   ;;  %vm93_vm1 = vcmask 1041408   ;;  %v636_v2 = vmov 65535  }
  0x29   :  { %134 = vmatprep.mubr.bf16.mxu0 %v635_v1  ;;  %v94_v3 = vsel %vm92_vm0, 4294967295, %v636_v2  ;;  %v527_v4 = vld [vmem:[#allocation3 + $0x4] ss:$8 sps:$4 sm:$0xff]   ;;  %v529_v5 = vld [vmem:[#allocation3] ss:$8 sps:$4 sm:$0xff]   ;;  %vm88_vm2 = vcmask 285696   ;;  %v147_v47 = vlaneseq }
  0x2a   :  { %102 = vmatprep.subr.bf16.mxu0 %v527_v4  ;;  %v530_v6 = vld [vmem:[#allocation3 + $0x14] ss:$8 sps:$4 sm:$0xff]   ;;  %v62_v7 = vld [vmem:[#allocation3 + $0x20] sm:$0x33]  ;;  %v95_v8 = vsel %vm93_vm1, %v94_v3, 0  ;;  %vm473_vm3 = vcmask 1024  }
  0x2b   :  { %103 = vmatpush1.bf16.msra.mxu0 %v529_v5  ;;  %v532_v9 = vld [vmem:[#allocation3 + $0x10] ss:$8 sps:$4 sm:$0xff]   ;;  %v486_v10 = vcombine.high %v62_v7, %v62_v7  ;;  %v485_v11 = vcombine.low %v62_v7, %v62_v7  ;;  %v535_v12 = vld [vmem:[#allocation5 + $0x4] ss:$8 sps:$4 sm:$0xff]   ;;  %v538_v15 = vld [vmem:[#allocation5 + $0x14] ss:$8 sps:$4 sm:$0xff]  }
  0x2c   :  { %104 = vmatprep.subr.bf16.mxu0 %v530_v6  ;;  %v537_v13 = vld [vmem:[#allocation5] ss:$8 sps:$4 sm:$0xff]   ;;  %369 = vmatprep.subr.bf16.mxu1 %v535_v12  ;;  %v540_v17 = vld [vmem:[#allocation5 + $0x10] ss:$8 sps:$4 sm:$0xff]   ;;  %v541_v18 = vld [vmem:[#allocation5 + $0x24] ss:$8 sps:$4 sm:$0xff]  }
  0x2d   :  { %v100_v14 = vand.u32 %v486_v10, %v95_v8  ;;  %v97_v16 = vand.u32 %v485_v11, %v95_v8  ;;  %370 = vmatpush1.bf16.msra.mxu1 %v537_v13  ;;  %v57_v19 = vld [vmem:[%s727_s0] sm:$0x1]  ;;  %v543_v20 = vld [vmem:[#allocation5 + $0x20] ss:$8 sps:$4 sm:$0xff]   ;;  %v546_v22 = vld [vmem:[#allocation5 + $0x30] ss:$8 sps:$4 sm:$0xff]  }
  0x2e   :  { %371 = vmatprep.subr.bf16.mxu1 %v538_v15  ;;  %v544_v21 = vld [vmem:[#allocation5 + $0x34] ss:$8 sps:$4 sm:$0xff]   ;;  %v547_v23 = vld [vmem:[#allocation5 + $0x44] ss:$8 sps:$4 sm:$0xff]   ;;  %v549_v24 = vld [vmem:[#allocation5 + $0x40] ss:$8 sps:$4 sm:$0xff]  }
  0x2f   :  { %105 = vmatpush1.bf16.msra.mxu0 %v532_v9  ;;  %v550_v25 = vld [vmem:[#allocation5 + $0x54] ss:$8 sps:$4 sm:$0xff]   ;;  %v552_v26 = vld [vmem:[#allocation5 + $0x50] ss:$8 sps:$4 sm:$0xff]   ;;  %v553_v27 = vld [vmem:[#allocation5 + $0x64] ss:$8 sps:$4 sm:$0xff]  }
  0x30   :  { %106 = vmatprep.subr.bf16.mxu0 %v100_v14  ;;  %v555_v28 = vld [vmem:[#allocation5 + $0x60] ss:$8 sps:$4 sm:$0xff]   ;;  %v556_v29 = vld [vmem:[#allocation5 + $0x74] ss:$8 sps:$4 sm:$0xff]   ;;  %v558_v30 = vld [vmem:[#allocation5 + $0x70] ss:$8 sps:$4 sm:$0xff]  }
  0x31   :  { %372 = vmatpush1.bf16.msra.mxu1 %v540_v17  ;;  %v559_v31 = vld [vmem:[#allocation5 + $0x84] ss:$8 sps:$4 sm:$0xff]   ;;  %v561_v32 = vld [vmem:[#allocation5 + $0x80] ss:$8 sps:$4 sm:$0xff]   ;;  %v562_v33 = vld [vmem:[#allocation5 + $0x94] ss:$8 sps:$4 sm:$0xff]  }
  0x32   :  { %373 = vmatprep.subr.bf16.mxu1 %v541_v18  ;;  %v564_v34 = vld [vmem:[#allocation5 + $0x90] ss:$8 sps:$4 sm:$0xff]   ;;  %v565_v35 = vld [vmem:[#allocation5 + $0xa4] ss:$8 sps:$4 sm:$0xff]   ;;  %v567_v36 = vld [vmem:[#allocation5 + $0xa0] ss:$8 sps:$4 sm:$0xff]  }
  0x33   :  { %107 = vmatpush1.bf16.msra.mxu0 %v97_v16  ;;  %v568_v37 = vld [vmem:[#allocation5 + $0xb4] ss:$8 sps:$4 sm:$0xff]   ;;  %v570_v38 = vld [vmem:[#allocation5 + $0xb0] ss:$8 sps:$4 sm:$0xff]   ;;  %v571_v39 = vld [vmem:[#allocation5 + $0xc4] ss:$8 sps:$4 sm:$0xff]  }
  0x34   :  { %v573_v40 = vld [vmem:[#allocation5 + $0xc0] ss:$8 sps:$4 sm:$0xff]   ;;  %v574_v41 = vld [vmem:[#allocation5 + $0xd4] ss:$8 sps:$4 sm:$0xff]   ;;  %v576_v42 = vld [vmem:[#allocation5 + $0xd0] ss:$8 sps:$4 sm:$0xff]  }
  0x35   :  { %374 = vmatpush1.bf16.msra.mxu1 %v543_v20  ;;  %v577_v43 = vld [vmem:[#allocation5 + $0xe4] ss:$8 sps:$4 sm:$0xff]   ;;  %v579_v44 = vld [vmem:[#allocation5 + $0xe0] ss:$8 sps:$4 sm:$0xff]   ;;  %v580_v45 = vld [vmem:[#allocation5 + $0xf4] ss:$8 sps:$4 sm:$0xff]  }
  0x36   :  { %487 = vmatmul.mubr.msk.bf16.vlgmr.msra.gmra.mrb[0].mxu0 %vm88_vm2, %v57_v19  ;;  %375 = vmatprep.subr.bf16.mxu1 %v544_v21  ;;  %v582_v46 = vld [vmem:[#allocation5 + $0xf0] ss:$8 sps:$4 sm:$0xff]   ;;  %v148_v48 = vshrl.u32 %v147_v47, 7 }
  0x37   :  { %v145_v50 = vld [vmem:[%s729_s2] sm:$0x3] }
  0x38   :  { %v149_v49 = vsub.s32 0, %v148_v48  ;;  %v153_v51 = vsub.s32 1, %v148_v48  ;;  %v412_v7 = vld [vmem:[%s731_s4] sm:$0x3] }
  0x39   :  { %376 = vmatpush1.bf16.msra.mxu1 %v546_v22  ;;  %v446_v21 = vld [vmem:[%s732_s5] sm:$0x3] }
  0x3a   :  { %377 = vmatprep.subr.bf16.mxu1 %v547_v23  ;;  %v150_v52 = vrot.slane %v145_v50, %v149_v49  ;;  %v154_v53 = vrot.slane %v145_v50, %v153_v51  ;;  %v417_v8 = vrot.slane %v412_v7, %v149_v49  ;;  %v421_v9 = vrot.slane %v412_v7, %v153_v51 }
  0x3c   :  { %v157_v54 = vpack.c.bf16 %v150_v52, %v150_v52  ;;  %v158_v55 = vpack.c.bf16 %v154_v53, %v154_v53  ;;  %v424_v10 = vpack.c.bf16 %v417_v8, %v417_v8  ;;  %v425_v11 = vpack.c.bf16 %v421_v9, %v421_v9 }
  0x3d   :  { %378 = vmatpush1.bf16.msra.mxu1 %v549_v24 }
  0x3e   :  { %379 = vmatprep.subr.bf16.mxu1 %v550_v25  ;;  %v160_v56 = vpack.i.b16 %v157_v54, %v157_v54  ;;  %v167_v57 = vpack.i.b16 %v158_v55, %v158_v55  ;;  %v427_v12 = vpack.i.b16 %v424_v10, %v424_v10  ;;  %v434_v13 = vpack.i.b16 %v425_v11, %v425_v11 }
  0x40   :  { %v165_v58 = vrot.slane %v160_v56, %v149_v49  ;;  %v172_v60 = vrot.slane %v167_v57, %v149_v49  ;;  %v432_v14 = vrot.slane %v427_v12, %v149_v49  ;;  %v439_v16 = vrot.slane %v434_v13, %v149_v49 }
  0x41   :  { %380 = vmatpush1.bf16.msra.mxu1 %v552_v26  ;;  %v451_v26 = vrot.slane %v446_v21, %v149_v49 }
  0x42   :  { %381 = vmatprep.subr.bf16.mxu1 %v553_v27 }
  0x45   :  { %382 = vmatpush1.bf16.msra.mxu1 %v555_v28  ;;  %v455_v28 = vrot.slane %v446_v21, %v153_v51 }
  0x46   :  { %383 = vmatprep.subr.bf16.mxu1 %v556_v29 }
  0x49   :  { %384 = vmatpush1.bf16.msra.mxu1 %v558_v30 }
  0x4a   :  { %385 = vmatprep.subr.bf16.mxu1 %v559_v31 }
  0x4d   :  { %386 = vmatpush1.bf16.msra.mxu1 %v561_v32 }
  0x4e   :  { %387 = vmatprep.subr.bf16.mxu1 %v562_v33 }
  0x51   :  { %388 = vmatpush1.bf16.msra.mxu1 %v564_v34 }
  0x52   :  { %389 = vmatprep.subr.bf16.mxu1 %v565_v35 }
  0x55   :  { %390 = vmatpush1.bf16.msra.mxu1 %v567_v36  ;;  %v520_v36 = vld [vmem:[#allocation2] ss:$0 sm:$0xff] }
  0x56   :  { %391 = vmatprep.subr.bf16.mxu1 %v568_v37 }
  0x59   :  { %392 = vmatpush1.bf16.msra.mxu1 %v570_v38 }
  0x5a   :  { %393 = vmatprep.subr.bf16.mxu1 %v571_v39 }
  0x5d   :  { %394 = vmatpush1.bf16.msra.mxu1 %v573_v40 }
  0x5e   :  { %395 = vmatprep.subr.bf16.mxu1 %v574_v41 }
  0x61   :  { %396 = vmatpush1.bf16.msra.mxu1 %v576_v42 }
  0x62   :  { %397 = vmatprep.subr.bf16.mxu1 %v577_v43 }
  0x65   :  { %398 = vmatpush1.bf16.msra.mxu1 %v579_v44 }
  0x66   :  { %399 = vmatprep.subr.bf16.mxu1 %v580_v45 }
  0x69   :  { %400 = vmatpush1.bf16.msra.mxu1 %v582_v46 }
 0x109   :  { %v136_v59 = vpop.f32.mrb[0].mxu0 }
 0x10a   :  { %v143_v61 = vpack.c.bf16 %v136_v59, %v136_v59  ;;  %v138_v62 = vpop.f32.mrb[1].mxu0 }
 0x10b   :  { %v144_v63 = vpack.c.bf16 %v138_v62, %v138_v62  ;;  %v140_v0 = vpop.f32.mrb[2].mxu0 }
 0x10c   :  { %v173_v2 = vadd.bf16 %v165_v58, %v143_v61  ;;  %v141_v3 = vpop.f32.mrb[3].mxu0 }
 0x10d   :  { %v174_v4 = vadd.bf16 %v172_v60, %v144_v63 }
 0x10e   :  { %v175_v6 = vmax.bf16 %v635_v1, %v173_v2 }
 0x10f   :  { %v176_v5 = vmax.bf16 %v635_v1, %v174_v4 }
 0x111   :  { %401 = vmatprep.mubr.bf16.mxu1 %v176_v5 }
 0x112   :  { %402 = vmatmul.mubr.bf16.vlgmr.msra.gmra.mrb[0].mxu1 %v175_v6 }
 0x1e5   :  { %v403_v15 = vpop.f32.mrb[0].mxu1 }
 0x1e6   :  { %v410_v17 = vpack.c.bf16 %v403_v15, %v403_v15  ;;  %v405_v18 = vpop.f32.mrb[1].mxu1 }
 0x1e7   :  { %v411_v19 = vpack.c.bf16 %v405_v18, %v405_v18  ;;  %v407_v20 = vpop.f32.mrb[2].mxu1 }
 0x1e8   :  { %v440_v22 = vadd.bf16 %v432_v14, %v410_v17  ;;  %v408_v23 = vpop.f32.mrb[3].mxu1 }
 0x1e9   :  { %v441_v24 = vadd.bf16 %v439_v16, %v411_v19 }
 0x1ea   :  { %v442_v25 = vmax.bf16 %v635_v1, %v440_v22 }
 0x1eb   :  { %v443_v27 = vmax.bf16 %v635_v1, %v441_v24 }
 0x1ec   :  { %v444_v29 = vunpack.c.l.bf16 %v442_v25 }
 0x1ed   :  { %v445_v30 = vunpack.c.l.bf16 %v443_v27 }
 0x1ee   :  { %v458_v31 = vmul.f32 %v451_v26, %v444_v29 }
 0x1ef   :  { %v459_v32 = vmul.f32 %v455_v28, %v445_v30 }
 0x1f0   :  { %v460_v33 = vsel %vm93_vm1, %v458_v31, 0.0 }
 0x1f1   :  { %v461_v34 = vsel %vm93_vm1, %v459_v32, 0.0 }
 0x1f2   :  { %v462_v35 = vadd.f32 %v461_v34, %v460_v33 }
 0x1f4   :  { %463 = vadd.xlane.f32.xlu0 %v462_v35 }
 0x281   :  { %v464_v37 = vpop.xlane.xlu0 %463 }
 0x282   :  { %v472_v38 = vadd.f32 %v520_v36, %v464_v37 }
 0x284   :  { %474 = vst.msk [vmem:[%s734_s7] sm:$0x3] %vm473_vm3, %v472_v38 }
 0x285   :  { %479 = vsyncpa [#allocation4], 1 }
 0x286   :  { %480 = vsyncpa [#allocation6], 1 }

</bundles_post_ra>
